<compile_context>
chip_gen: v5e
topology: v5e:2x2
jax: 0.10.0
libtpu: 0.0.40
codegen_flags: <defaults>
</compile_context>

<pallas_src>
import jax
import jax.numpy as jnp
from jax import lax
from jax.experimental import pallas as pl
from jax.experimental.pallas import tpu as pltpu


def _round_up(x, m):
    return ((x + m - 1) // m) * m


def _sparse_linear_kernel(x_ref, w_ref, m_ref, b_ref, o_ref, acc_ref):
    k = pl.program_id(1)

    @pl.when(k == 0)
    def _():
        acc_ref[...] = jnp.zeros_like(acc_ref)

    # Apply the (int8) mask in-kernel and contract over In of both operands
    # without materializing a transpose: (B, tk) x (tn, tk) -> (B, tn).
    sparse_w = w_ref[...] * m_ref[...].astype(w_ref.dtype)          # (tn, tk)
    acc_ref[...] += lax.dot_general(
        x_ref[...], sparse_w,
        dimension_numbers=(((1,), (1,)), ((), ())),
        preferred_element_type=jnp.float32,
    )

    @pl.when(k == pl.num_programs(1) - 1)
    def _():
        o_ref[...] = (acc_ref[...] + b_ref[...]).astype(o_ref.dtype)


def sparse_linear(x, weight, mask, bias, *, tn=256, tk=512):
    """y = x @ (weight * mask).T + bias   (F.linear semantics).

    x:      (B, In)   float32
    weight: (Out, In) float32
    mask:   (Out, In) bool / 0-1 float (applied in-kernel as int8)
    bias:   (Out,)    float32
    """
    B, In = x.shape
    Out, _ = weight.shape

    # Clamp tile sizes for small problems while keeping (8, 128) alignment.
    # (Defaults tn=256 / tk=512 keep the double-buffered W+M tiles ~1.3 MiB,
    #  well under v7x's 64 MiB VMEM and 256-aligned for the v6e MXU.)
    tn = min(tn, _round_up(Out, 128))
    tk = min(tk, _round_up(In, 128))

    B_pad = _round_up(B, 8)
    Out_pad = _round_up(Out, tn)
    In_pad = _round_up(In, tk)

    x_p = jnp.pad(x, ((0, B_pad - B), (0, In_pad - In)))
    w_p = jnp.pad(weight, ((0, Out_pad - Out), (0, In_pad - In)))
    # int8 mask: 4x less mask HBM traffic than a float32 mask.
    m_p = jnp.pad(mask.astype(jnp.int8), ((0, Out_pad - Out), (0, In_pad - In)))
    b_p = jnp.pad(bias, (0, Out_pad - Out)).reshape(1, Out_pad)

    grid = (Out_pad // tn, In_pad // tk)  # reduction (In) axis last

    cost = pl.CostEstimate(
        flops=2 * B * In * Out,
        transcendentals=0,
        bytes_accessed=(B * In * 4          # x
                        + Out * In * 4      # weight (f32)
                        + Out * In * 1      # mask (int8)
                        + B * Out * 4       # output
                        + Out * 4),         # bias
    )

    # TODO(synk): if the mask is static across many forward calls, pre-multiply
    # weight*mask once outside the hot loop and drop the mask stream entirely.
    y_p = pl.pallas_call(
        _sparse_linear_kernel,
        out_shape=jax.ShapeDtypeStruct((B_pad, Out_pad), x.dtype),
        grid_spec=pltpu.PrefetchScalarGridSpec(
            num_scalar_prefetch=0,
            grid=grid,
            in_specs=[
                pl.BlockSpec((B_pad, tk), lambda j, k: (0, k)),   # x
                pl.BlockSpec((tn, tk), lambda j, k: (j, k)),      # weight
                pl.BlockSpec((tn, tk), lambda j, k: (j, k)),      # mask (int8)
                pl.BlockSpec((1, tn), lambda j, k: (0, j)),       # bias
            ],
            out_specs=pl.BlockSpec((B_pad, tn), lambda j, k: (0, j)),
            scratch_shapes=[pltpu.VMEM((B_pad, tn), jnp.float32)],
        ),
        compiler_params=pltpu.CompilerParams(
            dimension_semantics=("parallel", "arbitrary"),
            vmem_limit_bytes=32 * 1024 * 1024,
        ),
        cost_estimate=cost,
    )(x_p, w_p, m_p, b_p)

    return y_p[:B, :Out]


if __name__ == "__main__":
    key = jax.random.PRNGKey(0)
    k_x, k_w, k_b, k_m = jax.random.split(key, 4)

    batch = 8
    in_features = 32
    out_features = 16
    sparsity = 0.5

    # Deterministic synthetic parameters (shapes match nn.Linear(in, out)).
    x = jax.random.normal(k_x, (batch, in_features), dtype=jnp.float32)
    bound = 1.0 / jnp.sqrt(in_features)
    weight = jax.random.uniform(
        k_w, (out_features, in_features), minval=-bound, maxval=bound,
        dtype=jnp.float32,
    )
    bias = jax.random.uniform(
        k_b, (out_features,), minval=-bound, maxval=bound, dtype=jnp.float32
    )
    # torch.rand(out, in) > sparsity  ->  boolean mask
    mask = jax.random.uniform(k_m, (out_features, in_features)) > sparsity

    y = sparse_linear(x, weight, mask, bias)
    jax.block_until_ready(y)

    # Pure-JAX reference check.
    y_ref = x @ (weight * mask.astype(jnp.float32)).T + bias
    assert y.shape == (batch, out_features)
    assert jnp.allclose(y, y_ref, atol=1e-5, rtol=1e-5)

    print("KERNEL_OK")
</pallas_src>

<mosaic_0001>
module attributes {stable_mosaic.version = 11 : i64} {
  func.func @_sparse_linear_kernel(%arg0: i32, %arg1: i32, %arg2: memref<8x128xf32, #tpu.memory_space<vmem>>, %arg3: memref<128x128xf32, #tpu.memory_space<vmem>>, %arg4: memref<128x128xi8, #tpu.memory_space<vmem>>, %arg5: memref<1x128xf32, #tpu.memory_space<vmem>>, %arg6: memref<8x128xf32, #tpu.memory_space<vmem>>, %arg7: memref<8x128xf32, #tpu.memory_space<vmem>>) attributes {dimension_semantics = [#tpu.dimension_semantics<parallel>, #tpu.dimension_semantics<arbitrary>], iteration_bounds = array<i64: 1, 1>, scalar_prefetch = 0 : i64, scratch_operands = 1 : i64, tpu.core_type = #tpu.core_type<tc>, window_params = [{transform_indices = @transform_0, window_bounds = array<i64: 8, 128>}, {transform_indices = @transform_1, window_bounds = array<i64: 128, 128>}, {transform_indices = @transform_2, window_bounds = array<i64: 128, 128>}, {transform_indices = @transform_3, window_bounds = array<i64: 1, 128>}, {transform_indices = @transform_4, window_bounds = array<i64: 8, 128>}]} {
    %c0_i32 = arith.constant 0 : i32
    %0 = arith.cmpi eq, %arg1, %c0_i32 : i32
    %1 = arith.extui %0 : i1 to i32
    %c0_i32_0 = arith.constant 0 : i32
    %2 = arith.cmpi ne, %1, %c0_i32_0 : i32
    scf.if %2 {
      %cst_12 = arith.constant 0.000000e+00 : f32
      %15 = vector.broadcast %cst_12 : f32 to vector<8x128xf32>
      %c0_13 = arith.constant 0 : index
      %c0_14 = arith.constant 0 : index
      %16 = vector.load %arg7[%c0_13, %c0_14] : memref<8x128xf32, #tpu.memory_space<vmem>>, vector<8x128xf32>
      tpu.vector_store %arg7[%c0_13, %c0_14], %15 {strides = array<i32>} : memref<8x128xf32, #tpu.memory_space<vmem>>, vector<8x128xf32>,
    } else {
    }
    %c0 = arith.constant 0 : index
    %c0_1 = arith.constant 0 : index
    %3 = vector.load %arg3[%c0, %c0_1] : memref<128x128xf32, #tpu.memory_space<vmem>>, vector<128x128xf32>
    %c0_2 = arith.constant 0 : index
    %c0_3 = arith.constant 0 : index
    %4 = vector.load %arg4[%c0_2, %c0_3] : memref<128x128xi8, #tpu.memory_space<vmem>>, vector<128x128xi8>
    %5 = arith.sitofp %4 : vector<128x128xi8> to vector<128x128xf32>
    %6 = arith.mulf %3, %5 : vector<128x128xf32>
    %c0_4 = arith.constant 0 : index
    %c0_5 = arith.constant 0 : index
    %7 = vector.load %arg7[%c0_4, %c0_5] : memref<8x128xf32, #tpu.memory_space<vmem>>, vector<8x128xf32>
    %c0_6 = arith.constant 0 : index
    %c0_7 = arith.constant 0 : index
    %8 = vector.load %arg2[%c0_6, %c0_7] : memref<8x128xf32, #tpu.memory_space<vmem>>, vector<8x128xf32>
    %cst = arith.constant dense<0.000000e+00> : vector<8x128xf32>
    %9 = tpu.matmul %8, %6, %cst {dimension_numbers = #tpu.dot_dimension_numbers<[1], [1], [0], [0], [0, 0, 1, 0], [], []>} : vector<8x128xf32>, vector<128x128xf32>, vector<8x128xf32> -> vector<8x128xf32>
    %10 = arith.addf %7, %9 : vector<8x128xf32>
    %c0_8 = arith.constant 0 : index
    %c0_9 = arith.constant 0 : index
    %11 = vector.load %arg7[%c0_8, %c0_9] : memref<8x128xf32, #tpu.memory_space<vmem>>, vector<8x128xf32>
    tpu.vector_store %arg7[%c0_8, %c0_9], %10 {strides = array<i32>} : memref<8x128xf32, #tpu.memory_space<vmem>>, vector<8x128xf32>,
    %c0_i32_10 = arith.constant 0 : i32
    %12 = arith.cmpi eq, %arg1, %c0_i32_10 : i32
    %13 = arith.extui %12 : i1 to i32
    %c0_i32_11 = arith.constant 0 : i32
    %14 = arith.cmpi ne, %13, %c0_i32_11 : i32
    scf.if %14 {
      %c0_12 = arith.constant 0 : index
      %c0_13 = arith.constant 0 : index
      %15 = vector.load %arg7[%c0_12, %c0_13] : memref<8x128xf32, #tpu.memory_space<vmem>>, vector<8x128xf32>
      %c0_14 = arith.constant 0 : index
      %c0_15 = arith.constant 0 : index
      %16 = vector.load %arg5[%c0_14, %c0_15] : memref<1x128xf32, #tpu.memory_space<vmem>>, vector<1x128xf32>
      %17 = vector.broadcast %16 : vector<1x128xf32> to vector<8x128xf32>
      %18 = arith.addf %15, %17 : vector<8x128xf32>
      %c0_16 = arith.constant 0 : index
      %c0_17 = arith.constant 0 : index
      %19 = vector.load %arg6[%c0_16, %c0_17] : memref<8x128xf32, #tpu.memory_space<vmem>>, vector<8x128xf32>
      tpu.vector_store %arg6[%c0_16, %c0_17], %18 {strides = array<i32>} : memref<8x128xf32, #tpu.memory_space<vmem>>, vector<8x128xf32>,
    } else {
    }
    return
  }
  func.func @transform_0(%arg0: i32, %arg1: i32) -> (i32, i32) {
    %c0_i32 = arith.constant 0 : i32
    %c0_i32_0 = arith.constant 0 : i32
    return %c0_i32, %arg1 : i32, i32
  }
  func.func @transform_1(%arg0: i32, %arg1: i32) -> (i32, i32) {
    %c0_i32 = arith.constant 0 : i32
    return %arg0, %arg1 : i32, i32
  }
  func.func @transform_2(%arg0: i32, %arg1: i32) -> (i32, i32) {
    %c0_i32 = arith.constant 0 : i32
    return %arg0, %arg1 : i32, i32
  }
  func.func @transform_3(%arg0: i32, %arg1: i32) -> (i32, i32) {
    %c0_i32 = arith.constant 0 : i32
    %c0_i32_0 = arith.constant 0 : i32
    return %c0_i32, %arg0 : i32, i32
  }
  func.func @transform_4(%arg0: i32, %arg1: i32) -> (i32, i32) {
    %c0_i32 = arith.constant 0 : i32
    %c0_i32_0 = arith.constant 0 : i32
    return %c0_i32, %arg0 : i32, i32
  }
}

</mosaic_0001>

<bundles_post_ra>
// kernel: tpu_custom_call.1
= control target key start
LH: loop header
LB: loop body
LE: loop exit
PB: predicated region body
PF: predicated region fallthrough
CT: control target
= control target key end

     0   :  { %9 = vsyncpa [#allocation4], 0  ;;  %s343_s0 = inlined_call_operand.hbm [shape: f32[8,128], index: 0, kind: input, shape index: {}]   ;;  %s344_s1 = inlined_call_operand.hbm [shape: f32[128,128], index: 1, kind: input, shape index: {}]   ;;  %s345_s2 = inlined_call_operand.hbm [shape: s8[128,128], index: 2, kind: input, shape index: {}]   ;;  %s346_s3 = inlined_call_operand.vmem [shape: f32[1,128], index: 3, kind: input, shape index: {}]   ;;  %s347_s4 = inlined_call_operand.hbm [shape: f32[8,128], index: 4, kind: output, shape index: {}]  }
   0x1   :  { %10 = vsyncpa [#allocation7], 0  ;;  %s27_s17 = sshll.u32 %s344_s1, 4  ;;  %s28_s17 = int_to_ptr.hbm [resolvable:$true] %s27_s17 }
   0x2   :  { %11 = vsyncpa [#allocation5], 0  ;;  %s297_s18 = smov [#allocation6]   ;;  %s17_s22 = sshll.u32 %s343_s0, 4  ;;  %s18_s22 = int_to_ptr.hbm [resolvable:$true] %s17_s22 }
   0x3   :  { %s29_s19 = sshll.u32 %s297_s18, 4  ;;  %s298_s23 = smov 128   ;;  %s30_s19 = int_to_ptr.vmem [resolvable:$true] %s29_s19 }
   0x4   :  { %s299_s24 = smov 8   ;;  %s300_s25 = smov [#allocation3]  }
   0x5   :  { %35 = dma.hbm_to_vmem [thread:$0]  %s28_s17, 2048, %s30_s19, [#allocation7], %s298_s23, %s298_s23, %s299_s24  }
   0x6   :  { %s19_s26 = sshll.u32 %s300_s25, 4  ;;  %s40_s29 = sshll.u32 %s345_s2, 4  ;;  %s20_s26 = int_to_ptr.vmem [resolvable:$true] %s19_s26  ;;  %s41_s29 = int_to_ptr.hbm [resolvable:$true] %s40_s29 }
   0x7   :  { %22 = dma.hbm_to_vmem [thread:$0]  %s18_s22, 128, %s20_s26, [#allocation4]  }
   0x8   :  { %s301_s1 = smov [#allocation8]  }
   0x9   :  { %s42_s30 = sshll.u32 %s301_s1, 4  ;;  %s43_s30 = int_to_ptr.vmem [resolvable:$true] %s42_s30 }
   0xa   :  { %48 = dma.hbm_to_vmem [thread:$0]  %s41_s29, 512, %s43_s30, [#allocation7], %s298_s23, %s298_s23, %s299_s24  }
   0xb   :  { %291 = dma.done.wait [#allocation4], 128  }
   0xc   :  { %292 = vsyncadd [#allocation4], 4294967168 }
   0xd   :  { %293 = dma.done.wait [#allocation7], 2560  }
   0xe   :  { %294 = vsyncadd [#allocation7], 4294964736  ;;  %v87_v0 = vld [vmem:[#allocation8 + $0x18] sm:$0xff]  ;;  %v82_v7 = vld [vmem:[#allocation6 + $0x70] sm:$0xff]  ;;  %s302_s5 = smov [#allocation9]   ;;  %s177_s9 = sshll.u32 %s347_s4, 4  ;;  %s178_s9 = int_to_ptr.hbm [resolvable:$true] %s177_s9 }
   0xf   :  { %v103_v1 = vunpack.c.3.s8 %v87_v0  ;;  %v102_v2 = vunpack.c.2.s8 %v87_v0  ;;  %v83_v3 = vld [vmem:[#allocation6 + $0x78] sm:$0xff]  ;;  %v101_v6 = vunpack.c.1.s8 %v87_v0  ;;  %v100_v11 = vunpack.c.0.s8 %v87_v0  ;;  %v81_v12 = vld [vmem:[#allocation6 + $0x68] sm:$0xff]  ;;  %v86_v13 = vld [vmem:[#allocation8 + $0x10] sm:$0xff]  ;;  %s175_s6 = sshll.u32 %s302_s5, 4  ;;  %s176_s6 = int_to_ptr.vmem [resolvable:$true] %s175_s6 }
  0x10   :  { %v99_v16 = vunpack.c.3.s8 %v86_v13  ;;  %v80_v17 = vld [vmem:[#allocation6 + $0x60] sm:$0xff]  ;;  %v98_v20 = vunpack.c.2.s8 %v86_v13  ;;  %v79_v21 = vld [vmem:[#allocation6 + $0x58] sm:$0xff]  ;;  %v97_v24 = vunpack.c.1.s8 %v86_v13  ;;  %v78_v25 = vld [vmem:[#allocation6 + $0x50] sm:$0xff]  ;;  %v96_v28 = vunpack.c.0.s8 %v86_v13 }
  0x11   :  { %v119_v4 = vcvt.s32.f32 %v103_v1  ;;  %v118_v5 = vcvt.s32.f32 %v102_v2  ;;  %v117_v10 = vcvt.s32.f32 %v101_v6  ;;  %v116_v15 = vcvt.s32.f32 %v100_v11  ;;  %v77_v29 = vld [vmem:[#allocation6 + $0x48] sm:$0xff]  ;;  %v76_v34 = vld [vmem:[#allocation6 + $0x40] sm:$0xff]  ;;  %v75_v38 = vld [vmem:[#allocation6 + $0x38] sm:$0xff] }
  0x12   :  { %v115_v19 = vcvt.s32.f32 %v99_v16  ;;  %v114_v23 = vcvt.s32.f32 %v98_v20  ;;  %v113_v27 = vcvt.s32.f32 %v97_v24  ;;  %v85_v30 = vld [vmem:[#allocation8 + $0x8] sm:$0xff]  ;;  %v112_v32 = vcvt.s32.f32 %v96_v28  ;;  %v74_v42 = vld [vmem:[#allocation6 + $0x30] sm:$0xff]  ;;  %v84_v47 = vld [vmem:[#allocation8] sm:$0xff] }
  0x13   :  { %v135_v8 = vmul.f32 %v119_v4, %v83_v3  ;;  %v134_v9 = vmul.f32 %v118_v5, %v82_v7  ;;  %v133_v14 = vmul.f32 %v117_v10, %v81_v12  ;;  %v132_v18 = vmul.f32 %v116_v15, %v80_v17  ;;  %v73_v46 = vld [vmem:[#allocation6 + $0x28] sm:$0xff]  ;;  %v72_v51 = vld [vmem:[#allocation6 + $0x20] sm:$0xff]  ;;  %v71_v55 = vld [vmem:[#allocation6 + $0x18] sm:$0xff] }
  0x14   :  { %v131_v22 = vmul.f32 %v115_v19, %v79_v21  ;;  %v130_v26 = vmul.f32 %v114_v23, %v78_v25  ;;  %v129_v31 = vmul.f32 %v113_v27, %v77_v29  ;;  %v95_v33 = vunpack.c.3.s8 %v85_v30  ;;  %v70_v59 = vld [vmem:[#allocation6 + $0x10] sm:$0xff]  ;;  %v69_v63 = vld [vmem:[#allocation6 + $0x8] sm:$0xff]  ;;  %v68_v2 = vld [vmem:[#allocation6] sm:$0xff] }
  0x15   :  { %138 = vmatpush.xpose.msra.mxu0 %v135_v8  ;;  %v128_v35 = vmul.f32 %v112_v32, %v76_v34  ;;  %v94_v37 = vunpack.c.2.s8 %v85_v30  ;;  %v93_v41 = vunpack.c.1.s8 %v85_v30  ;;  %v92_v45 = vunpack.c.0.s8 %v85_v30  ;;  %v137_v4 = vld [vmem:[#allocation3] sm:$0xff] }
  0x16   :  { %v111_v36 = vcvt.s32.f32 %v95_v33  ;;  %v91_v50 = vunpack.c.3.s8 %v84_v47  ;;  %v90_v54 = vunpack.c.2.s8 %v84_v47  ;;  %v89_v58 = vunpack.c.1.s8 %v84_v47  ;;  %v194_v5 = vld [vmem:[%s346_s3] ss:$0 sm:$0xff] }
  0x17   :  { %v110_v40 = vcvt.s32.f32 %v94_v37  ;;  %v109_v44 = vcvt.s32.f32 %v93_v41  ;;  %v108_v49 = vcvt.s32.f32 %v92_v45  ;;  %v88_v62 = vunpack.c.0.s8 %v84_v47 }
  0x18   :  { %v127_v39 = vmul.f32 %v111_v36, %v75_v38  ;;  %v107_v53 = vcvt.s32.f32 %v91_v50  ;;  %v106_v57 = vcvt.s32.f32 %v90_v54  ;;  %v105_v61 = vcvt.s32.f32 %v89_v58 }
  0x19   :  { %139 = vmatpush.xpose.msra.mxu0 %v134_v9  ;;  %v126_v43 = vmul.f32 %v110_v40, %v74_v42  ;;  %v125_v48 = vmul.f32 %v109_v44, %v73_v46  ;;  %v124_v52 = vmul.f32 %v108_v49, %v72_v51  ;;  %v104_v1 = vcvt.s32.f32 %v88_v62 }
  0x1a   :  { %v123_v56 = vmul.f32 %v107_v53, %v71_v55  ;;  %v122_v60 = vmul.f32 %v106_v57, %v70_v59  ;;  %v121_v0 = vmul.f32 %v105_v61, %v69_v63 }
  0x1b   :  { %v120_v3 = vmul.f32 %v104_v1, %v68_v2 }
  0x1d   :  { %140 = vmatpush.xpose.msra.mxu0 %v133_v14 }
  0x21   :  { %141 = vmatpush.xpose.msra.mxu0 %v132_v18 }
  0x25   :  { %142 = vmatpush.xpose.msra.mxu0 %v131_v22 }
  0x29   :  { %143 = vmatpush.xpose.msra.mxu0 %v130_v26 }
  0x2d   :  { %144 = vmatpush.xpose.msra.mxu0 %v129_v31 }
  0x31   :  { %145 = vmatpush.xpose.msra.mxu0 %v128_v35 }
  0x35   :  { %146 = vmatpush.xpose.msra.mxu0 %v127_v39 }
  0x39   :  { %147 = vmatpush.xpose.msra.mxu0 %v126_v43 }
  0x3d   :  { %148 = vmatpush.xpose.msra.mxu0 %v125_v48 }
  0x41   :  { %149 = vmatpush.xpose.msra.mxu0 %v124_v52 }
  0x45   :  { %150 = vmatpush.xpose.msra.mxu0 %v123_v56 }
  0x49   :  { %151 = vmatpush.xpose.msra.mxu0 %v122_v60 }
  0x4d   :  { %152 = vmatpush.xpose.msra.mxu0 %v121_v0 }
  0x51   :  { %153 = vmatpush.xpose.msra.mxu0 %v120_v3 }
  0x54   :  { %154 = vmatmul.f32.vlgmr.msra.gmra.mxu0 %v137_v4 }
  0xd1   :  { %v155_v6 = vpop.f32.mrf.mxu0 }
  0xd2   :  { %v168_v7 = vadd.f32 %v194_v5, %v155_v6 }
  0xd4   :  { %169 = vst [vmem:[#allocation9] sm:$0xff] %v168_v7 }
  0xd5   :  { %180 = dma.vmem_to_hbm [thread:$0]  %s176_s6, 128, %s178_s9, [#allocation5]  }
  0xd6   :  { %295 = dma.done.wait [#allocation5], 128  }
  0xd7   :  { %296 = vsyncadd [#allocation5], 4294967168 }
  0xd8   :  { %185 = vsyncpa [#allocation4], 1 }
  0xd9   :  { %186 = vsyncpa [#allocation7], 1 }
  0xda   :  { %187 = vsyncpa [#allocation5], 1 }

</bundles_post_ra>
